<compile_context>
chip_gen: v7x
topology: tpu7x:2x2x1
jax: 0.10.0
libtpu: 0.0.40
codegen_flags: <defaults>
</compile_context>

<pallas_src>
import functools

import jax
import jax.numpy as jnp
from jax.experimental import pallas as pl
from jax.experimental.pallas import tpu as pltpu

_LANE = 128     # last-dim tile granularity (vreg lanes)
_SUBLANE = 8    # second-to-last-dim granularity (vreg sublanes)


def _round_up(x, m):
    return (x + m - 1) // m * m


def _fused_circuit_mlp_kernel(x_ref, w1_ref, m1_ref, b1_ref,
                              w2_ref, m2_ref, b2_ref,
                              y_ref, l0_ref, *,
                              temperature, din, dhid, dout):
    """Fused ContSparseLinear -> ReLU -> ContSparseLinear + per-layer L0."""
    t = jnp.float32(temperature)

    # Continuous-sparsification soft masks (EUP sigmoid) and masked weights
    # (VPU elementwise), all in f32.
    mask1 = jax.nn.sigmoid(t * m1_ref[...])          # (Din_p,  Dhid_p)
    mask2 = jax.nn.sigmoid(t * m2_ref[...])          # (Dhid_p, Dout_p)
    w1_eff = (w1_ref[...] * mask1).astype(jnp.bfloat16)
    w2_eff = (w2_ref[...] * mask2).astype(jnp.bfloat16)

    # Layer 1 (MXU, bf16 in / f32 acc) + bias + ReLU; hidden stays on-chip.
    x_bf16 = x_ref[...].astype(jnp.bfloat16)
    h = jnp.dot(x_bf16, w1_eff, preferred_element_type=jnp.float32) + b1_ref[...]
    h = jnp.maximum(h, 0.0)

    # Layer 2 (MXU) + bias.
    y = jnp.dot(h.astype(jnp.bfloat16), w2_eff,
                preferred_element_type=jnp.float32) + b2_ref[...]
    y_ref[...] = y.astype(y_ref.dtype)

    # L0 statistics depend only on the masks -> compute once (first batch
    # tile), not once per batch tile.  Exclude padded mask entries
    # (sigmoid(0) = 0.5 would otherwise inflate the sum).
    @pl.when(pl.program_id(0) == 0)
    def _():
        r1 = jax.lax.broadcasted_iota(jnp.int32, mask1.shape, 0) < din
        c1 = jax.lax.broadcasted_iota(jnp.int32, mask1.shape, 1) < dhid
        r2 = jax.lax.broadcasted_iota(jnp.int32, mask2.shape, 0) < dhid
        c2 = jax.lax.broadcasted_iota(jnp.int32, mask2.shape, 1) < dout
        l0_ref[0] = jnp.sum(jnp.where(r1 & c1, mask1, 0.0))
        l0_ref[1] = jnp.sum(jnp.where(r2 & c2, mask2, 0.0))


def circuit_mlp_forward(x, params, *, temperature, dims):
    """x: [B, Din] (unpadded). params: padded, pre-transposed weights/masks/bias.

    Returns (logits [B, Dout] unpadded, total_l0 scalar).
    """
    w1_t, m1_t, b1, w2_t, m2_t, b2 = params
    din, dhid, dout = dims
    batch = x.shape[0]
    din_p, dhid_p = w1_t.shape
    dout_p = w2_t.shape[1]

    # Batch tile: multiple of 8 sublanes, capped at 128 rows per step.
    tm = min(128, _round_up(batch, _SUBLANE))
    b_p = _round_up(batch, tm)
    num_tiles = b_p // tm

    # Zero-pad activations to the (8, 128)-aligned slab.
    x_p = jnp.zeros((b_p, din_p), jnp.float32).at[:batch, :din].set(x)

    kernel = functools.partial(
        _fused_circuit_mlp_kernel,
        temperature=float(temperature), din=din, dhid=dhid, dout=dout)

    flops = 2 * b_p * din_p * dhid_p + 2 * b_p * dhid_p * dout_p
    bytes_accessed = 4 * (x_p.size + w1_t.size + m1_t.size + b1.size
                          + w2_t.size + m2_t.size + b2.size
                          + b_p * dout_p + 2)

    y_p, l0 = pl.pallas_call(
        kernel,
        grid=(num_tiles,),
        in_specs=[
            pl.BlockSpec((tm, din_p), lambda i: (i, 0)),        # x tile
            pl.BlockSpec((din_p, dhid_p), lambda i: (0, 0)),    # W1^T (resident)
            pl.BlockSpec((din_p, dhid_p), lambda i: (0, 0)),    # M1^T (resident)
            pl.BlockSpec((1, dhid_p), lambda i: (0, 0)),        # b1
            pl.BlockSpec((dhid_p, dout_p), lambda i: (0, 0)),   # W2^T (resident)
            pl.BlockSpec((dhid_p, dout_p), lambda i: (0, 0)),   # M2^T (resident)
            pl.BlockSpec((1, dout_p), lambda i: (0, 0)),        # b2
        ],
        out_specs=(
            pl.BlockSpec((tm, dout_p), lambda i: (i, 0)),                 # logits
            pl.BlockSpec(memory_space=pltpu.MemorySpace.SMEM),            # L0 (2,)
        ),
        out_shape=(
            jax.ShapeDtypeStruct((b_p, dout_p), jnp.float32),
            jax.ShapeDtypeStruct((2,), jnp.float32),
        ),
        compiler_params=pltpu.CompilerParams(
            # Batch axis is "arbitrary" (serial): the SMEM L0 output block is
            # revisited across batch tiles, so sharding it across TensorCores
            # would be unsafe.  See TODO(synk) at top for the parallel variant.
            dimension_semantics=("arbitrary",),
            vmem_limit_bytes=32 * 1024 * 1024,
        ),
        cost_estimate=pl.CostEstimate(
            flops=flops,
            transcendentals=din_p * dhid_p + dhid_p * dout_p,
            bytes_accessed=bytes_accessed,
        ),
    )(x_p, w1_t, m1_t, b1, w2_t, m2_t, b2)

    return y_p[:batch, :dout], l0[0] + l0[1]


class CircuitModelPallas:
    """JAX/Pallas equivalent of CircuitModel wrapping a 2-layer MLP root model.

    config.mask_method == 'continuous_sparsification'
    config.mask_hparams = {'ablation': 'none', 'mask_unit': 'weight',
                           'mask_bias': False, 'mask_init_value': 0.0}
    config.freeze_base  = True   (gradients only; forward math identical)
    config.add_l0       = True, config.l0_lambda = 1e-4
    """

    def __init__(self, key, in_features=32, hidden=64, out_features=16,
                 mask_init_value=0.0, temperature=1.0,
                 add_l0=True, l0_lambda=1e-4):
        self.temperature = float(temperature)
        self.add_l0 = add_l0
        self.l0_lambda = l0_lambda
        self.dims = (in_features, hidden, out_features)

        din_p = _round_up(in_features, _LANE)
        dhid_p = _round_up(hidden, _LANE)
        dout_p = _round_up(out_features, _LANE)

        k1, k2, k3, k4 = jax.random.split(key, 4)

        def linear_init(kw, kb, fan_in, fan_out):
            # PyTorch nn.Linear default init: U(-1/sqrt(fan_in), 1/sqrt(fan_in)).
            bound = 1.0 / (fan_in ** 0.5)
            w = jax.random.uniform(kw, (fan_out, fan_in), jnp.float32, -bound, bound)
            b = jax.random.uniform(kb, (fan_out,), jnp.float32, -bound, bound)
            return w, b

        w1, b1 = linear_init(k1, k2, in_features, hidden)
        w2, b2 = linear_init(k3, k4, hidden, out_features)

        # Pre-transpose to [in, out] and zero-pad to (128-multiple) slabs.
        # Zero-padded weights guarantee padded regions contribute nothing to
        # the matmul regardless of the (padded) mask value.
        self.w1_t = (jnp.zeros((din_p, dhid_p), jnp.float32)
                     .at[:in_features, :hidden].set(w1.T))
        self.w2_t = (jnp.zeros((dhid_p, dout_p), jnp.float32)
                     .at[:hidden, :out_features].set(w2.T))
        self.b1 = jnp.zeros((1, dhid_p), jnp.float32).at[0, :hidden].set(b1)
        self.b2 = jnp.zeros((1, dout_p), jnp.float32).at[0, :out_features].set(b2)

        # ContSparseLayer initializes mask params to constant mask_init_value.
        # Padding value is irrelevant (weights are zero there; L0 excludes it).
        self.m1_t = (jnp.zeros((din_p, dhid_p), jnp.float32)
                     .at[:in_features, :hidden].set(mask_init_value))
        self.m2_t = (jnp.zeros((dhid_p, dout_p), jnp.float32)
                     .at[:hidden, :out_features].set(mask_init_value))

    # TODO(synk): with freeze_base=True and a fixed temperature, W_eff =
    # W * sigmoid(T*M) could be precomputed once outside the hot path to halve
    # weight-stream bandwidth at inference; kept in-kernel here to preserve the
    # training-mode forward (L0 needs the live mask anyway).
    def forward(self, x):
        params = (self.w1_t, self.m1_t, self.b1, self.w2_t, self.m2_t, self.b2)
        logits, total_l0 = circuit_mlp_forward(
            x, params, temperature=self.temperature, dims=self.dims)

        output = {"logits": logits, "loss": None, "l0": total_l0}
        # CircuitModel.forward: L0 penalty is only added when the root-model
        # output carries a non-None loss (requires labels); loss is None here.
        if self.add_l0 and output["loss"] is not None:
            output["loss"] = output["loss"] + self.l0_lambda * total_l0
        return output

    __call__ = forward


if __name__ == "__main__":
    key = jax.random.PRNGKey(0)
    k_model, k_x = jax.random.split(key)

    batch, in_features, hidden, out_features = 4, 32, 64, 16
    model = CircuitModelPallas(k_model, in_features, hidden, out_features)

    x = jax.random.normal(k_x, (batch, in_features), dtype=jnp.float32)

    out = model(x)
    jax.block_until_ready(out["logits"])
    jax.block_until_ready(out["l0"])

    # Pure-JAX reference (f32) for correctness at bf16-MXU tolerance.
    w1_t = model.w1_t[:in_features, :hidden]
    m1_t = model.m1_t[:in_features, :hidden]
    b1 = model.b1[0, :hidden]
    w2_t = model.w2_t[:hidden, :out_features]
    m2_t = model.m2_t[:hidden, :out_features]
    b2 = model.b2[0, :out_features]
    mask1 = jax.nn.sigmoid(model.temperature * m1_t)
    mask2 = jax.nn.sigmoid(model.temperature * m2_t)
    h_ref = jnp.maximum(x @ (w1_t * mask1) + b1, 0.0)
    logits_ref = h_ref @ (w2_t * mask2) + b2
    l0_ref = jnp.sum(mask1) + jnp.sum(mask2)

    assert out["logits"].shape == (batch, out_features)
    assert jnp.isfinite(out["logits"]).all()
    assert jnp.allclose(out["logits"], logits_ref, atol=3e-2, rtol=3e-2)
    assert jnp.allclose(out["l0"], l0_ref, atol=1e-2, rtol=1e-5)

    print("KERNEL_OK")
</pallas_src>

<mosaic_0001>
module attributes {stable_mosaic.version = 11 : i64} {
  func.func @_fused_circuit_mlp_kernel(%arg0: i32, %arg1: memref<8x128xf32, #tpu.memory_space<vmem>>, %arg2: memref<128x128xf32, #tpu.memory_space<vmem>>, %arg3: memref<128x128xf32, #tpu.memory_space<vmem>>, %arg4: memref<1x128xf32, #tpu.memory_space<vmem>>, %arg5: memref<128x128xf32, #tpu.memory_space<vmem>>, %arg6: memref<128x128xf32, #tpu.memory_space<vmem>>, %arg7: memref<1x128xf32, #tpu.memory_space<vmem>>, %arg8: memref<8x128xf32, #tpu.memory_space<vmem>>, %arg9: memref<2xf32, #tpu.memory_space<smem>>) attributes {dimension_semantics = [#tpu.dimension_semantics<arbitrary>], iteration_bounds = array<i64: 1>, scalar_prefetch = 0 : i64, scratch_operands = 0 : i64, tpu.core_type = #tpu.core_type<tc>, window_params = [{transform_indices = @transform_0, window_bounds = array<i64: 8, 128>}, {pipeline_mode = #tpu.pipeline_mode<synchronous>, transform_indices = @transform_1, window_bounds = array<i64: 128, 128>}, {pipeline_mode = #tpu.pipeline_mode<synchronous>, transform_indices = @transform_2, window_bounds = array<i64: 128, 128>}, {pipeline_mode = #tpu.pipeline_mode<synchronous>, transform_indices = @transform_3, window_bounds = array<i64: 1, 128>}, {pipeline_mode = #tpu.pipeline_mode<synchronous>, transform_indices = @transform_4, window_bounds = array<i64: 128, 128>}, {pipeline_mode = #tpu.pipeline_mode<synchronous>, transform_indices = @transform_5, window_bounds = array<i64: 128, 128>}, {pipeline_mode = #tpu.pipeline_mode<synchronous>, transform_indices = @transform_6, window_bounds = array<i64: 1, 128>}, {transform_indices = @transform_7, window_bounds = array<i64: 8, 128>}, {transform_indices = @transform_8, window_bounds = array<i64: 2>}]} {
    %c0 = arith.constant 0 : index
    %c0_0 = arith.constant 0 : index
    %0 = vector.load %arg3[%c0, %c0_0] : memref<128x128xf32, #tpu.memory_space<vmem>>, vector<128x128xf32>
    %cst = arith.constant 1.000000e+00 : f32
    %1 = vector.broadcast %cst : f32 to vector<128x128xf32>
    %2 = arith.mulf %1, %0 : vector<128x128xf32>
    %3 = arith.negf %2 : vector<128x128xf32>
    %4 = math.exp %3 : vector<128x128xf32>
    %cst_1 = arith.constant 1.000000e+00 : f32
    %5 = vector.broadcast %cst_1 : f32 to vector<128x128xf32>
    %6 = arith.addf %5, %4 : vector<128x128xf32>
    %7 = arith.divf %5, %6 : vector<128x128xf32>
    %c0_2 = arith.constant 0 : index
    %c0_3 = arith.constant 0 : index
    %8 = vector.load %arg6[%c0_2, %c0_3] : memref<128x128xf32, #tpu.memory_space<vmem>>, vector<128x128xf32>
    %cst_4 = arith.constant 1.000000e+00 : f32
    %9 = vector.broadcast %cst_4 : f32 to vector<128x128xf32>
    %10 = arith.mulf %9, %8 : vector<128x128xf32>
    %11 = arith.negf %10 : vector<128x128xf32>
    %12 = math.exp %11 : vector<128x128xf32>
    %cst_5 = arith.constant 1.000000e+00 : f32
    %13 = vector.broadcast %cst_5 : f32 to vector<128x128xf32>
    %14 = arith.addf %13, %12 : vector<128x128xf32>
    %15 = arith.divf %13, %14 : vector<128x128xf32>
    %c0_6 = arith.constant 0 : index
    %c0_7 = arith.constant 0 : index
    %16 = vector.load %arg2[%c0_6, %c0_7] : memref<128x128xf32, #tpu.memory_space<vmem>>, vector<128x128xf32>
    %17 = arith.mulf %16, %7 : vector<128x128xf32>
    %18 = arith.truncf %17 : vector<128x128xf32> to vector<128x128xbf16>
    %c0_8 = arith.constant 0 : index
    %c0_9 = arith.constant 0 : index
    %19 = vector.load %arg5[%c0_8, %c0_9] : memref<128x128xf32, #tpu.memory_space<vmem>>, vector<128x128xf32>
    %20 = arith.mulf %19, %15 : vector<128x128xf32>
    %21 = arith.truncf %20 : vector<128x128xf32> to vector<128x128xbf16>
    %c0_10 = arith.constant 0 : index
    %c0_11 = arith.constant 0 : index
    %22 = vector.load %arg1[%c0_10, %c0_11] : memref<8x128xf32, #tpu.memory_space<vmem>>, vector<8x128xf32>
    %23 = arith.truncf %22 : vector<8x128xf32> to vector<8x128xbf16>
    %cst_12 = arith.constant dense<0.000000e+00> : vector<8x128xf32>
    %24 = tpu.matmul %23, %18, %cst_12 {dimension_numbers = #tpu.dot_dimension_numbers<[1], [0], [0], [1], [0, 0, 1, 1], [], []>} : vector<8x128xbf16>, vector<128x128xbf16>, vector<8x128xf32> -> vector<8x128xf32>
    %c0_13 = arith.constant 0 : index
    %c0_14 = arith.constant 0 : index
    %25 = vector.load %arg4[%c0_13, %c0_14] : memref<1x128xf32, #tpu.memory_space<vmem>>, vector<1x128xf32>
    %26 = vector.broadcast %25 : vector<1x128xf32> to vector<8x128xf32>
    %27 = arith.addf %24, %26 : vector<8x128xf32>
    %cst_15 = arith.constant 0.000000e+00 : f32
    %28 = vector.broadcast %cst_15 : f32 to vector<8x128xf32>
    %29 = arith.maximumf %27, %28 : vector<8x128xf32>
    %30 = arith.truncf %29 : vector<8x128xf32> to vector<8x128xbf16>
    %cst_16 = arith.constant dense<0.000000e+00> : vector<8x128xf32>
    %31 = tpu.matmul %30, %21, %cst_16 {dimension_numbers = #tpu.dot_dimension_numbers<[1], [0], [0], [1], [0, 0, 1, 1], [], []>} : vector<8x128xbf16>, vector<128x128xbf16>, vector<8x128xf32> -> vector<8x128xf32>
    %c0_17 = arith.constant 0 : index
    %c0_18 = arith.constant 0 : index
    %32 = vector.load %arg7[%c0_17, %c0_18] : memref<1x128xf32, #tpu.memory_space<vmem>>, vector<1x128xf32>
    %33 = vector.broadcast %32 : vector<1x128xf32> to vector<8x128xf32>
    %34 = arith.addf %31, %33 : vector<8x128xf32>
    %c0_19 = arith.constant 0 : index
    %c0_20 = arith.constant 0 : index
    %35 = vector.load %arg8[%c0_19, %c0_20] : memref<8x128xf32, #tpu.memory_space<vmem>>, vector<8x128xf32>
    tpu.vector_store %arg8[%c0_19, %c0_20], %34 {strides = array<i32>} : memref<8x128xf32, #tpu.memory_space<vmem>>, vector<8x128xf32>,
    %c0_i32 = arith.constant 0 : i32
    %36 = arith.cmpi eq, %arg0, %c0_i32 : i32
    %37 = arith.extui %36 : i1 to i32
    %c0_i32_21 = arith.constant 0 : i32
    %38 = arith.cmpi ne, %37, %c0_i32_21 : i32
    scf.if %38 {
      %39 = tpu.iota {dimensions = array<i32: 0>} : vector<128x128xi32>
      %c32_i32 = arith.constant 32 : i32
      %40 = vector.broadcast %c32_i32 : i32 to vector<128x128xi32>
      %41 = arith.cmpi slt, %39, %40 : vector<128x128xi32>
      %42 = tpu.iota {dimensions = array<i32: 1>} : vector<128x128xi32>
      %c64_i32 = arith.constant 64 : i32
      %43 = vector.broadcast %c64_i32 : i32 to vector<128x128xi32>
      %44 = arith.cmpi slt, %42, %43 : vector<128x128xi32>
      %45 = tpu.iota {dimensions = array<i32: 0>} : vector<128x128xi32>
      %c64_i32_22 = arith.constant 64 : i32
      %46 = vector.broadcast %c64_i32_22 : i32 to vector<128x128xi32>
      %47 = arith.cmpi slt, %45, %46 : vector<128x128xi32>
      %48 = tpu.iota {dimensions = array<i32: 1>} : vector<128x128xi32>
      %c16_i32 = arith.constant 16 : i32
      %49 = vector.broadcast %c16_i32 : i32 to vector<128x128xi32>
      %50 = arith.cmpi slt, %48, %49 : vector<128x128xi32>
      %51 = arith.andi %41, %44 : vector<128x128xi1>
      %cst_23 = arith.constant 0.000000e+00 : f32
      %52 = vector.broadcast %cst_23 : f32 to vector<128x128xf32>
      %53 = arith.select %51, %7, %52 : vector<128x128xi1>, vector<128x128xf32>
      %54 = vector.shape_cast %53 : vector<128x128xf32> to vector<1x128x128xf32>
      %cst_24 = arith.constant dense<0.000000e+00> : vector<1xf32>
      %55 = vector.multi_reduction <add>, %54, %cst_24 [1, 2] : vector<1x128x128xf32> to vector<1xf32>
      %56 = vector.shape_cast %55 : vector<1xf32> to vector<1x1x1xf32>
      %57 = vector.extract %56[0, 0, 0] : f32 from vector<1x1x1xf32>
      %c0_25 = arith.constant 0 : index
      %58 = memref.load %arg9[%c0_25] : memref<2xf32, #tpu.memory_space<smem>>
      memref.store %57, %arg9[%c0_25] : memref<2xf32, #tpu.memory_space<smem>>
      %59 = arith.andi %47, %50 : vector<128x128xi1>
      %cst_26 = arith.constant 0.000000e+00 : f32
      %60 = vector.broadcast %cst_26 : f32 to vector<128x128xf32>
      %61 = arith.select %59, %15, %60 : vector<128x128xi1>, vector<128x128xf32>
      %62 = vector.shape_cast %61 : vector<128x128xf32> to vector<1x128x128xf32>
      %cst_27 = arith.constant dense<0.000000e+00> : vector<1xf32>
      %63 = vector.multi_reduction <add>, %62, %cst_27 [1, 2] : vector<1x128x128xf32> to vector<1xf32>
      %64 = vector.shape_cast %63 : vector<1xf32> to vector<1x1x1xf32>
      %65 = vector.extract %64[0, 0, 0] : f32 from vector<1x1x1xf32>
      %c1 = arith.constant 1 : index
      %66 = memref.load %arg9[%c1] : memref<2xf32, #tpu.memory_space<smem>>
      memref.store %65, %arg9[%c1] : memref<2xf32, #tpu.memory_space<smem>>
    } else {
    }
    return
  }
  func.func @transform_0(%arg0: i32) -> (i32, i32) {
    %c0_i32 = arith.constant 0 : i32
    %c0_i32_0 = arith.constant 0 : i32
    return %arg0, %c0_i32 : i32, i32
  }
  func.func @transform_1(%arg0: i32) -> (i32, i32) {
    %c0_i32 = arith.constant 0 : i32
    %c0_i32_0 = arith.constant 0 : i32
    %c0_i32_1 = arith.constant 0 : i32
    return %c0_i32, %c0_i32_0 : i32, i32
  }
  func.func @transform_2(%arg0: i32) -> (i32, i32) {
    %c0_i32 = arith.constant 0 : i32
    %c0_i32_0 = arith.constant 0 : i32
    %c0_i32_1 = arith.constant 0 : i32
    return %c0_i32, %c0_i32_0 : i32, i32
  }
  func.func @transform_3(%arg0: i32) -> (i32, i32) {
    %c0_i32 = arith.constant 0 : i32
    %c0_i32_0 = arith.constant 0 : i32
    %c0_i32_1 = arith.constant 0 : i32
    return %c0_i32, %c0_i32_0 : i32, i32
  }
  func.func @transform_4(%arg0: i32) -> (i32, i32) {
    %c0_i32 = arith.constant 0 : i32
    %c0_i32_0 = arith.constant 0 : i32
    %c0_i32_1 = arith.constant 0 : i32
    return %c0_i32, %c0_i32_0 : i32, i32
  }
  func.func @transform_5(%arg0: i32) -> (i32, i32) {
    %c0_i32 = arith.constant 0 : i32
    %c0_i32_0 = arith.constant 0 : i32
    %c0_i32_1 = arith.constant 0 : i32
    return %c0_i32, %c0_i32_0 : i32, i32
  }
  func.func @transform_6(%arg0: i32) -> (i32, i32) {
    %c0_i32 = arith.constant 0 : i32
    %c0_i32_0 = arith.constant 0 : i32
    %c0_i32_1 = arith.constant 0 : i32
    return %c0_i32, %c0_i32_0 : i32, i32
  }
  func.func @transform_7(%arg0: i32) -> (i32, i32) {
    %c0_i32 = arith.constant 0 : i32
    %c0_i32_0 = arith.constant 0 : i32
    return %arg0, %c0_i32 : i32, i32
  }
  func.func @transform_8(%arg0: i32) -> i32 {
    %c0_i32 = arith.constant 0 : i32
    %c0_i32_0 = arith.constant 0 : i32
    return %c0_i32 : i32
  }
}

</mosaic_0001>

<bundles_post_ra>
// kernel: tpu_custom_call.1
= control target key start
LH: loop header
LB: loop body
LE: loop exit
PB: predicated region body
PF: predicated region fallthrough
CT: control target
= control target key end

     0   :  { %14 = vsyncpa [#allocation3], 0  ;;  %s1326_s0 = inlined_call_operand.hbm [shape: f32[8,128], index: 0, kind: input, shape index: {}]   ;;  %s1327_s1 = inlined_call_operand.hbm [shape: f32[128,128], index: 1, kind: input, shape index: {}]   ;;  %s1328_s2 = inlined_call_operand.hbm [shape: f32[128,128], index: 2, kind: input, shape index: {}]   ;;  %s1329_s3 = inlined_call_operand.vmem [shape: f32[1,128], index: 3, kind: input, shape index: {}]   ;;  %s1330_s4 = inlined_call_operand.hbm [shape: f32[128,128], index: 4, kind: input, shape index: {}]   ;;  %s1331_s5 = inlined_call_operand.hbm [shape: f32[128,128], index: 5, kind: input, shape index: {}]   ;;  %s1332_s6 = inlined_call_operand.vmem [shape: f32[1,128], index: 6, kind: input, shape index: {}]   ;;  %s1333_s7 = inlined_call_operand.hbm [shape: f32[8,128], index: 7, kind: output, shape index: {0}]   ;;  %s1334_s8 = inlined_call_operand.hbm [shape: f32[2], index: 8, kind: output, shape index: {1}]  }
   0x1   :  { %15 = vsyncpa [#allocation7], 0 }
   0x2   :  { %16 = vsyncpa [#allocation10], 0 }
   0x3   :  { %17 = vsyncpa [#allocation4], 0 }
   0x4   :  { %18 = vsyncpa [#allocation5], 0  ;;  %s1090_s27 = smov [#allocation6]   ;;  %s938_s9 = scalar_lea.hbm %s1327_s1, 2048 }
   0x5   :  { %s34_s28 = sshll.u32 %s1090_s27, 4  ;;  %p939_p0 = scmp.ne.s32.totalorder %s1327_s1, %s938_s9  ;;  %s35_s28 = int_to_ptr.vmem [resolvable:$true] %s34_s28 }
   0x6   :  { %p942_p1 = scmp.lt.u32.totalorder %s938_s9, %s1327_s1 }
   0x8   :  { %p944_p2 = pnand %p942_p1, %p939_p0 }
   0xa   :  { %947 = shalt.err (!%p944_p2)
}
   0xb   :  { %s948_s14 = scalar_lea.vmem %s35_s28, 2048  ;;  %p953_p4 = scmp.lt.s32.totalorder %s35_s28, %s35_s28 }
   0xc   :  { %p949_p3 = scmp.ne.s32.totalorder %s35_s28, %s948_s14  ;;  %p954_p5 = scmp.lt.s32.totalorder %s948_s14, %s948_s14 }
   0xe   :  { %p955_p6 = por %p954_p5, %p953_p4 }
  0x10   :  { %p956_p7 = pnand %p955_p6, %p949_p3 }
  0x12   :  { %959 = shalt.err (!%p956_p7)
}
  0x13   :  { %s1091_s15 = smov 128   ;;  %s1092_s16 = smov 8  }
  0x14   :  { %40 = dma.hbm_to_vmem [thread:$0]  %s1327_s1, 2048, %s35_s28, [#allocation7], %s1091_s15, %s1091_s15, %s1092_s16  }
  0x15   :  { %s1093_s19 = smov [#allocation9]   ;;  %s1094_s21 = smov [#allocation2]  }
  0x16   :  { %s60_s20 = sshll.u32 %s1093_s19, 4  ;;  %s25_s22 = sshll.u32 %s1094_s21, 4  ;;  %s61_s20 = int_to_ptr.vmem [resolvable:$true] %s60_s20  ;;  %s26_s22 = int_to_ptr.vmem [resolvable:$true] %s25_s22 }
  0x17   :  { %s960_s25 = scalar_lea.hbm %s1330_s4, 2048 }
  0x18   :  { %p961_p8 = scmp.ne.s32.totalorder %s1330_s4, %s960_s25  ;;  %p964_p9 = scmp.lt.u32.totalorder %s960_s25, %s1330_s4 }
  0x1a   :  { %p966_p10 = pnand %p964_p9, %p961_p8 }
  0x1c   :  { %969 = shalt.err (!%p966_p10)
}
  0x1d   :  { %s970_s1 = scalar_lea.vmem %s61_s20, 2048  ;;  %p975_p12 = scmp.lt.s32.totalorder %s61_s20, %s61_s20 }
  0x1e   :  { %p971_p11 = scmp.ne.s32.totalorder %s61_s20, %s970_s1  ;;  %p976_p13 = scmp.lt.s32.totalorder %s970_s1, %s970_s1 }
  0x20   :  { %p977_p0 = por %p976_p13, %p975_p12 }
  0x22   :  { %p978_p1 = pnand %p977_p0, %p971_p11 }
  0x24   :  { %981 = shalt.err (!%p978_p1)
}
  0x25   :  { %66 = dma.hbm_to_vmem [thread:$0]  %s1330_s4, 2048, %s61_s20, [#allocation10], %s1091_s15, %s1091_s15, %s1092_s16  }
  0x26   :  { %s982_s12 = scalar_lea.hbm %s1326_s0, 128 }
  0x27   :  { %p983_p2 = scmp.ne.s32.totalorder %s1326_s0, %s982_s12  ;;  %p986_p3 = scmp.lt.u32.totalorder %s982_s12, %s1326_s0 }
  0x29   :  { %p988_p4 = pnand %p986_p3, %p983_p2 }
  0x2b   :  { %991 = shalt.err (!%p988_p4)
}
  0x2c   :  { %s992_s19 = scalar_lea.vmem %s26_s22, 128  ;;  %p997_p6 = scmp.lt.s32.totalorder %s26_s22, %s26_s22 }
  0x2d   :  { %p993_p5 = scmp.ne.s32.totalorder %s26_s22, %s992_s19  ;;  %p998_p7 = scmp.lt.s32.totalorder %s992_s19, %s992_s19 }
  0x2f   :  { %p999_p8 = por %p998_p7, %p997_p6 }
  0x31   :  { %p1000_p9 = pnand %p999_p8, %p993_p5 }
  0x33   :  { %1003 = shalt.err (!%p1000_p9)
}
  0x34   :  { %28 = dma.hbm_to_vmem [thread:$0]  %s1326_s0, 128, %s26_s22, [#allocation3]  }
  0x35   :  { %s1095_s21 = smov [#allocation8]   ;;  %s1096_s24 = smov [#allocation11]  }
  0x36   :  { %s46_s23 = sshll.u32 %s1095_s21, 4  ;;  %s72_s25 = sshll.u32 %s1096_s24, 4  ;;  %s47_s23 = int_to_ptr.vmem [resolvable:$true] %s46_s23  ;;  %s73_s25 = int_to_ptr.vmem [resolvable:$true] %s72_s25 }
  0x37   :  { %s1004_s29 = scalar_lea.hbm %s1328_s2, 2048 }
  0x38   :  { %p1005_p10 = scmp.ne.s32.totalorder %s1328_s2, %s1004_s29  ;;  %p1008_p11 = scmp.lt.u32.totalorder %s1004_s29, %s1328_s2 }
  0x3a   :  { %p1010_p12 = pnand %p1008_p11, %p1005_p10 }
  0x3c   :  { %1013 = shalt.err (!%p1010_p12)
}
  0x3d   :  { %s1014_s0 = scalar_lea.vmem %s47_s23, 2048  ;;  %p1019_p0 = scmp.lt.s32.totalorder %s47_s23, %s47_s23 }
  0x3e   :  { %p1015_p13 = scmp.ne.s32.totalorder %s47_s23, %s1014_s0  ;;  %p1020_p1 = scmp.lt.s32.totalorder %s1014_s0, %s1014_s0 }
  0x40   :  { %p1021_p2 = por %p1020_p1, %p1019_p0 }
  0x42   :  { %p1022_p3 = pnand %p1021_p2, %p1015_p13 }
  0x44   :  { %1025 = shalt.err (!%p1022_p3)
}
  0x45   :  { %52 = dma.hbm_to_vmem [thread:$0]  %s1328_s2, 2048, %s47_s23, [#allocation7], %s1091_s15, %s1091_s15, %s1092_s16  }
  0x46   :  { %s1026_s13 = scalar_lea.hbm %s1331_s5, 2048 }
  0x47   :  { %p1027_p4 = scmp.ne.s32.totalorder %s1331_s5, %s1026_s13  ;;  %p1030_p5 = scmp.lt.u32.totalorder %s1026_s13, %s1331_s5 }
  0x49   :  { %p1032_p6 = pnand %p1030_p5, %p1027_p4 }
  0x4b   :  { %1035 = shalt.err (!%p1032_p6)
}
  0x4c   :  { %s1036_s4 = scalar_lea.vmem %s73_s25, 2048  ;;  %p1041_p8 = scmp.lt.s32.totalorder %s73_s25, %s73_s25 }
  0x4d   :  { %p1037_p7 = scmp.ne.s32.totalorder %s73_s25, %s1036_s4  ;;  %p1042_p9 = scmp.lt.s32.totalorder %s1036_s4, %s1036_s4 }
  0x4f   :  { %p1043_p10 = por %p1042_p9, %p1041_p8 }
  0x51   :  { %p1044_p11 = pnand %p1043_p10, %p1037_p7 }
  0x53   :  { %1047 = shalt.err (!%p1044_p11)
}
  0x54   :  { %78 = dma.hbm_to_vmem [thread:$0]  %s1331_s5, 2048, %s73_s25, [#allocation10], %s1091_s15, %s1091_s15, %s1092_s16  }
  0x55   :  { %1080 = dma.done.wait [#allocation3], 128  }
  0x56   :  { %1081 = vsyncadd [#allocation3], 4294967168 }
  0x57   :  { %1082 = dma.done.wait [#allocation7], 4096  }
  0x58   :  { %1083 = vsyncadd [#allocation7], 4294963200 }
  0x59   :  { %1084 = dma.done.wait [#allocation10], 4096  }
  0x5a   :  { %1085 = vsyncadd [#allocation10], 4294963200  ;;  %v1097_v0 = vmov 0.0   ;;  %vm1098_vm0 = vmmov 0   ;;  %v97_v1 = vld [vmem:[#allocation8] sm:$0xff]  ;;  %v98_v2 = vld [vmem:[#allocation8 + $0x8] sm:$0xff] }
  0x5b   :  { %755 = vmatprep.subr.bf16.mxu0 %v1097_v0  ;;  %771 = vmatprep.mubr.msk.bf16.mxu0 %vm1098_vm0, %v1097_v0  ;;  %v703_v3 = vmul.f32 -1.442695, %v97_v1  ;;  %v704_v4 = vmul.f32 -1.442695, %v98_v2  ;;  %v99_v5 = vld [vmem:[#allocation8 + $0x10] sm:$0xff]  ;;  %v100_v6 = vld [vmem:[#allocation8 + $0x18] sm:$0xff] }
  0x5c   :  { %775 = vmatprep.subr.bf16.mxu1 %v1097_v0  ;;  %791 = vmatprep.mubr.msk.bf16.mxu1 %vm1098_vm0, %v1097_v0  ;;  %v705_v7 = vmul.f32 -1.442695, %v99_v5  ;;  %v706_v8 = vmul.f32 -1.442695, %v100_v6  ;;  %v101_v9 = vld [vmem:[#allocation8 + $0x20] sm:$0xff]  ;;  %v102_v10 = vld [vmem:[#allocation8 + $0x28] sm:$0xff] }
  0x5d   :  { %810 = vpow2.f32 %v703_v3  ;;  %v707_v11 = vmul.f32 -1.442695, %v101_v9  ;;  %v708_v12 = vmul.f32 -1.442695, %v102_v10  ;;  %v103_v13 = vld [vmem:[#allocation8 + $0x30] sm:$0xff]  ;;  %v104_v14 = vld [vmem:[#allocation8 + $0x38] sm:$0xff] }
  0x5e   :  { %812 = vpow2.f32 %v704_v4  ;;  %v709_v15 = vmul.f32 -1.442695, %v103_v13  ;;  %v710_v16 = vmul.f32 -1.442695, %v104_v14  ;;  %v105_v17 = vld [vmem:[#allocation8 + $0x40] sm:$0xff]  ;;  %v106_v18 = vld [vmem:[#allocation8 + $0x48] sm:$0xff] }
  0x5f   :  { %814 = vpow2.f32 %v705_v7  ;;  %v711_v19 = vmul.f32 -1.442695, %v105_v17  ;;  %v107_v20 = vld [vmem:[#allocation8 + $0x50] sm:$0xff]  ;;  %v712_v21 = vmul.f32 -1.442695, %v106_v18  ;;  %v108_v22 = vld [vmem:[#allocation8 + $0x58] sm:$0xff] }
  0x60   :  { %816 = vpow2.f32 %v706_v8  ;;  %v713_v23 = vmul.f32 -1.442695, %v107_v20  ;;  %v109_v24 = vld [vmem:[#allocation8 + $0x60] sm:$0xff]  ;;  %v714_v25 = vmul.f32 -1.442695, %v108_v22  ;;  %v110_v44 = vld [vmem:[#allocation8 + $0x68] sm:$0xff] }
  0x61   :  { %818 = vpow2.f32 %v707_v11  ;;  %v715_v26 = vmul.f32 -1.442695, %v109_v24  ;;  %v111_v49 = vld [vmem:[#allocation8 + $0x70] sm:$0xff]  ;;  %v321_v51 = vld [vmem:[#allocation6] sm:$0xff]  ;;  %v716_v53 = vmul.f32 -1.442695, %v110_v44 }
  0x62   :  { %820 = vpow2.f32 %v708_v12  ;;  %v112_v54 = vld [vmem:[#allocation8 + $0x78] sm:$0xff]  ;;  %v322_v56 = vld [vmem:[#allocation6 + $0x8] sm:$0xff]  ;;  %v209_v58 = vld [vmem:[#allocation11] sm:$0xff]  ;;  %v717_v62 = vmul.f32 -1.442695, %v111_v49  ;;  %s1048_s24 = scalar_lea.hbm %s1334_s8, 16 }
  0x63   :  { %822 = vpow2.f32 %v709_v15  ;;  %v323_v60 = vld [vmem:[#allocation6 + $0x10] sm:$0xff]  ;;  %v210_v63 = vld [vmem:[#allocation11 + $0x8] sm:$0xff]  ;;  %v324_v3 = vld [vmem:[#allocation6 + $0x18] sm:$0xff]  ;;  %v718_v4 = vmul.f32 -1.442695, %v112_v54  ;;  %p1049_p12 = scmp.ne.s32.totalorder %s1334_s8, %s1048_s24  ;;  %p1052_p13 = scmp.lt.u32.totalorder %s1048_s24, %s1334_s8 }
  0x64   :  { %824 = vpow2.f32 %v710_v16  ;;  %v211_v5 = vld [vmem:[#allocation11 + $0x10] sm:$0xff]  ;;  %v719_v8 = vmul.f32 -1.442695, %v209_v58  ;;  %v212_v9 = vld [vmem:[#allocation11 + $0x18] sm:$0xff]  ;;  %v213_v10 = vld [vmem:[#allocation11 + $0x20] sm:$0xff] }
  0x65   :  { %826 = vpow2.f32 %v711_v19  ;;  %v325_v13 = vld [vmem:[#allocation6 + $0x20] sm:$0xff]  ;;  %v326_v14 = vld [vmem:[#allocation6 + $0x28] sm:$0xff]  ;;  %v720_v15 = vmul.f32 -1.442695, %v210_v63  ;;  %v721_v19 = vmul.f32 -1.442695, %v211_v5  ;;  %p1054_p0 = pnand %p1052_p13, %p1049_p12 }
  0x66   :  { %828 = vpow2.f32 %v712_v21  ;;  %v214_v20 = vld [vmem:[#allocation11 + $0x28] sm:$0xff]  ;;  %v722_v22 = vmul.f32 -1.442695, %v212_v9  ;;  %v215_v24 = vld [vmem:[#allocation11 + $0x30] sm:$0xff]  ;;  %v332_v58 = vld [vmem:[#allocation6 + $0x58] sm:$0xff] }
  0x67   :  { %v811_v27 = vpop.eup %810  ;;  %830 = vpow2.f32 %v713_v23  ;;  %v723_v23 = vmul.f32 -1.442695, %v213_v10 }
  0x68   :  { %v813_v28 = vpop.eup %812  ;;  %v161_v29 = vadd.f32 1.0, %v811_v27  ;;  %832 = vpow2.f32 %v714_v25 }
  0x69   :  { %v815_v30 = vpop.eup %814  ;;  %v162_v31 = vadd.f32 1.0, %v813_v28  ;;  %834 = vpow2.f32 %v715_v26 }
  0x6a   :  { %v817_v32 = vpop.eup %816  ;;  %836 = vrcp.f32 %v161_v29  ;;  %v163_v33 = vadd.f32 1.0, %v815_v30  ;;  %v216_v29 = vld [vmem:[#allocation11 + $0x38] sm:$0xff]  ;;  %v217_v30 = vld [vmem:[#allocation11 + $0x40] sm:$0xff] }
  0x6b   :  { %v819_v34 = vpop.eup %818  ;;  %838 = vrcp.f32 %v162_v31  ;;  %v164_v35 = vadd.f32 1.0, %v817_v32  ;;  %v327_v32 = vld [vmem:[#allocation6 + $0x30] sm:$0xff] }
  0x6c   :  { %v821_v36 = vpop.eup %820  ;;  %840 = vrcp.f32 %v163_v33  ;;  %v165_v37 = vadd.f32 1.0, %v819_v34  ;;  %v328_v33 = vld [vmem:[#allocation6 + $0x38] sm:$0xff]  ;;  %v724_v34 = vmul.f32 -1.442695, %v214_v20 }
  0x6d   :  { %v823_v38 = vpop.eup %822  ;;  %842 = vrcp.f32 %v164_v35  ;;  %v166_v39 = vadd.f32 1.0, %v821_v36  ;;  %v725_v36 = vmul.f32 -1.442695, %v215_v24  ;;  %v220_v24 = vld [vmem:[#allocation11 + $0x58] sm:$0xff] }
  0x6e   :  { %v825_v40 = vpop.eup %824  ;;  %844 = vrcp.f32 %v165_v37  ;;  %v167_v41 = vadd.f32 1.0, %v823_v38  ;;  %v726_v38 = vmul.f32 -1.442695, %v216_v29 }
  0x6f   :  { %v827_v42 = vpop.eup %826  ;;  %846 = vrcp.f32 %v166_v39  ;;  %v168_v43 = vadd.f32 1.0, %v825_v40  ;;  %v218_v39 = vld [vmem:[#allocation11 + $0x48] sm:$0xff]  ;;  %v727_v40 = vmul.f32 -1.442695, %v217_v30  ;;  %v335_v30 = vld [vmem:[#allocation6 + $0x70] sm:$0xff] }
  0x70   :  { %v829_v45 = vpop.eup %828  ;;  %848 = vrcp.f32 %v167_v41  ;;  %v169_v46 = vadd.f32 1.0, %v827_v42  ;;  %v728_v49 = vmul.f32 -1.442695, %v218_v39 }
  0x71   :  { %v831_v47 = vpop.eup %830  ;;  %850 = vrcp.f32 %v168_v43  ;;  %v170_v48 = vadd.f32 1.0, %v829_v45 }
  0x72   :  { %v833_v50 = vpop.eup %832  ;;  %852 = vrcp.f32 %v169_v46  ;;  %v171_v52 = vadd.f32 1.0, %v831_v47  ;;  %v329_v46 = vld [vmem:[#allocation6 + $0x40] sm:$0xff]  ;;  %v330_v47 = vld [vmem:[#allocation6 + $0x48] sm:$0xff] }
  0x73   :  { %v835_v55 = vpop.eup %834  ;;  %854 = vrcp.f32 %v170_v48  ;;  %v172_v57 = vadd.f32 1.0, %v833_v50 }
  0x74   :  { %v1222_v59 = vpop.eup %836  ;;  %856 = vrcp.f32 %v171_v52  ;;  %v173_v61 = vadd.f32 1.0, %v835_v55 }
  0x75   :  { %v1224_v1 = vpop.eup %838  ;;  %v337_v2 = vmul.f32 %v1222_v59, %v321_v51  ;;  %858 = vrcp.f32 %v172_v57 }
  0x76   :  { %v1227_v6 = vpop.eup %840  ;;  %v338_v7 = vmul.f32 %v1224_v1, %v322_v56  ;;  %860 = vpow2.f32 %v716_v53  ;;  %v331_v56 = vld [vmem:[#allocation6 + $0x50] sm:$0xff] }
  0x77   :  { %v1230_v11 = vpop.eup %842  ;;  %v339_v12 = vmul.f32 %v1227_v6, %v323_v60  ;;  %862 = vrcp.f32 %v173_v61 }
  0x78   :  { %v845_v16 = vpop.eup %844  ;;  %v353_v17 = vpack.c.bf16 %v338_v7, %v337_v2  ;;  %v340_v18 = vmul.f32 %v1230_v11, %v324_v3  ;;  %864 = vpow2.f32 %v717_v62 }
  0x79   :  { %v847_v21 = vpop.eup %846  ;;  %866 = vpow2.f32 %v718_v4  ;;  %v341_v27 = vmul.f32 %v845_v16, %v325_v13 }
  0x7a   :  { %v849_v25 = vpop.eup %848  ;;  %756 = vmatpush3.bf16.msra.mxu0 %v353_v17  ;;  %v354_v26 = vpack.c.bf16 %v340_v18, %v339_v12  ;;  %v342_v28 = vmul.f32 %v847_v21, %v326_v14  ;;  %868 = vpow2.f32 %v719_v8  ;;  %v219_v17 = vld [vmem:[#allocation11 + $0x50] sm:$0xff] }
  0x7b   :  { %v851_v31 = vpop.eup %850  ;;  %757 = vmatprep.subr.bf16.mxu0 %v1097_v0  ;;  %870 = vpow2.f32 %v720_v15  ;;  %v343_v43 = vmul.f32 %v849_v25, %v327_v32  ;;  %v333_v15 = vld [vmem:[#allocation6 + $0x60] sm:$0xff] }
  0x7c   :  { %v853_v35 = vpop.eup %852  ;;  %872 = vpow2.f32 %v721_v19  ;;  %v355_v42 = vpack.c.bf16 %v342_v28, %v341_v27  ;;  %v344_v44 = vmul.f32 %v851_v31, %v328_v33  ;;  %v729_v28 = vmul.f32 -1.442695, %v219_v17 }
  0x7d   :  { %v855_v37 = vpop.eup %854  ;;  %874 = vpow2.f32 %v722_v22  ;;  %v345_v54 = vmul.f32 %v853_v35, %v329_v46  ;;  %v334_v22 = vld [vmem:[#allocation6 + $0x68] sm:$0xff]  ;;  %v730_v35 = vmul.f32 -1.442695, %v220_v24 }
  0x7e   :  { %v857_v41 = vpop.eup %856  ;;  %758 = vmatpush3.bf16.msra.mxu0 %v354_v26  ;;  %876 = vpow2.f32 %v723_v23  ;;  %v356_v53 = vpack.c.bf16 %v344_v44, %v343_v43  ;;  %v346_v55 = vmul.f32 %v855_v37, %v330_v47  ;;  %v361_v37 = vld [vmem:[#allocation9] sm:$0xff]  ;;  %v401_v47 = vld [vmem:[#allocation2] sm:$0xff] }
  0x7f   :  { %v859_v45 = vpop.eup %858  ;;  %759 = vmatprep.subr.bf16.mxu0 %v1097_v0  ;;  %878 = vpow2.f32 %v724_v34  ;;  %v347_v2 = vmul.f32 %v857_v41, %v331_v56  ;;  %v336_v34 = vld [vmem:[#allocation6 + $0x78] sm:$0xff]  ;;  %v366_v56 = vld [vmem:[#allocation9 + $0x28] sm:$0xff] }
  0x80   :  { %v861_v48 = vpop.eup %860  ;;  %880 = vpow2.f32 %v725_v36  ;;  %v357_v5 = vpack.c.bf16 %v346_v55, %v345_v54  ;;  %v348_v7 = vmul.f32 %v859_v45, %v332_v58  ;;  %v363_v45 = vld [vmem:[#allocation9 + $0x10] sm:$0xff]  ;;  %v365_v55 = vld [vmem:[#allocation9 + $0x20] sm:$0xff]  ;;  %v402_v58 = vpack.c.bf16 %v401_v47, %v401_v47 }
  0x81   :  { %v863_v50 = vpop.eup %862  ;;  %v174_v51 = vadd.f32 1.0, %v861_v48  ;;  %882 = vpow2.f32 %v726_v38 }
  0x82   :  { %v865_v52 = vpop.eup %864  ;;  %760 = vmatpush3.bf16.msra.mxu0 %v355_v42  ;;  %884 = vpow2.f32 %v727_v40  ;;  %v358_v19 = vpack.c.bf16 %v348_v7, %v347_v2  ;;  %v349_v26 = vmul.f32 %v863_v50, %v333_v15  ;;  %v362_v42 = vld [vmem:[#allocation9 + $0x8] sm:$0xff]  ;;  %v367_v7 = vld [vmem:[#allocation9 + $0x30] sm:$0xff] }
  0x83   :  { %v867_v57 = vpop.eup %866  ;;  %761 = vmatprep.subr.bf16.mxu0 %v1097_v0  ;;  %886 = vrcp.f32 %v174_v51  ;;  %v175_v60 = vadd.f32 1.0, %v865_v52 }
  0x84   :  { %v869_v61 = vpop.eup %868  ;;  %v176_v62 = vadd.f32 1.0, %v867_v57  ;;  %888 = vpow2.f32 %v728_v49  ;;  %v364_v49 = vld [vmem:[#allocation9 + $0x18] sm:$0xff] }
  0x85   :  { %v871_v63 = vpop.eup %870  ;;  %890 = vrcp.f32 %v175_v60  ;;  %v273_v3 = vadd.f32 1.0, %v869_v61 }
  0x86   :  { %v873_v4 = vpop.eup %872  ;;  %762 = vmatpush3.bf16.msra.mxu0 %v356_v53  ;;  %892 = vrcp.f32 %v176_v62  ;;  %v274_v8 = vadd.f32 1.0, %v871_v63 }
  0x87   :  { %v875_v9 = vpop.eup %874  ;;  %763 = vmatprep.subr.bf16.mxu0 %v1097_v0  ;;  %894 = vrcp.f32 %v273_v3  ;;  %v275_v10 = vadd.f32 1.0, %v873_v4 }
  0x88   :  { %v877_v12 = vpop.eup %876  ;;  %896 = vrcp.f32 %v274_v8  ;;  %v276_v13 = vadd.f32 1.0, %v875_v9  ;;  %v368_v8 = vld [vmem:[#allocation9 + $0x38] sm:$0xff] }
  0x89   :  { %v879_v14 = vpop.eup %878  ;;  %898 = vrcp.f32 %v275_v10  ;;  %v277_v16 = vadd.f32 1.0, %v877_v12 }
  0x8a   :  { %v881_v18 = vpop.eup %880  ;;  %764 = vmatpush3.bf16.msra.mxu0 %v357_v5  ;;  %900 = vrcp.f32 %v276_v13  ;;  %v278_v20 = vadd.f32 1.0, %v879_v14 }
  0x8b   :  { %v883_v21 = vpop.eup %882  ;;  %765 = vmatprep.subr.bf16.mxu0 %v1097_v0  ;;  %902 = vrcp.f32 %v277_v16  ;;  %v279_v23 = vadd.f32 1.0, %v881_v18  ;;  %v369_v18 = vld [vmem:[#allocation9 + $0x40] sm:$0xff] }
  0x8c   :  { %v885_v25 = vpop.eup %884  ;;  %904 = vrcp.f32 %v278_v20  ;;  %v280_v27 = vadd.f32 1.0, %v883_v21 }
  0x8d   :  { %v887_v29 = vpop.eup %886  ;;  %906 = vrcp.f32 %v279_v23  ;;  %v281_v31 = vadd.f32 1.0, %v885_v25  ;;  %v371_v25 = vld [vmem:[#allocation9 + $0x50] sm:$0xff] }
  0x8e   :  { %v889_v32 = vpop.eup %888  ;;  %766 = vmatpush3.bf16.msra.mxu0 %v358_v19  ;;  %v350_v33 = vmul.f32 %v887_v29, %v334_v22  ;;  %908 = vrcp.f32 %v280_v27  ;;  %v370_v19 = vld [vmem:[#allocation9 + $0x48] sm:$0xff]  ;;  %v372_v27 = vld [vmem:[#allocation9 + $0x58] sm:$0xff] }
  0x8f   :  { %v891_v36 = vpop.eup %890  ;;  %767 = vmatprep.subr.bf16.mxu0 %v1097_v0  ;;  %v282_v38 = vadd.f32 1.0, %v889_v32  ;;  %910 = vrcp.f32 %v281_v31  ;;  %v221_v32 = vld [vmem:[#allocation11 + $0x60] sm:$0xff] }
  0x90   :  { %v893_v39 = vpop.eup %892  ;;  %v359_v40 = vpack.c.bf16 %v350_v33, %v349_v26  ;;  %v351_v41 = vmul.f32 %v891_v36, %v335_v30  ;;  %912 = vpow2.f32 %v729_v28  ;;  %v222_v33 = vld [vmem:[#allocation11 + $0x68] sm:$0xff]  ;;  %v223_v36 = vld [vmem:[#allocation11 + $0x70] sm:$0xff] }
  0x91   :  { %v1240_v43 = vpop.eup %894  ;;  %v352_v44 = vmul.f32 %v893_v39, %v336_v34  ;;  %914 = vrcp.f32 %v282_v38  ;;  %v731_v34 = vmul.f32 -1.442695, %v221_v32  ;;  %v733_v38 = vmul.f32 -1.442695, %v223_v36 }
  0x92   :  { %v1242_v46 = vpop.eup %896  ;;  %768 = vmatpush3.bf16.msra.mxu0 %v359_v40  ;;  %v377_v48 = vmul.f32 %v1240_v43, %v361_v37  ;;  %916 = vpow2.f32 %v730_v35  ;;  %v732_v35 = vmul.f32 -1.442695, %v222_v33  ;;  %v224_v37 = vld [vmem:[#allocation11 + $0x78] sm:$0xff] }
  0x93   :  { %v1245_v50 = vpop.eup %898  ;;  %769 = vmatprep.subr.bf16.mxu0 %v1097_v0  ;;  %v360_v51 = vpack.c.bf16 %v352_v44, %v351_v41  ;;  %v378_v52 = vmul.f32 %v1242_v46, %v362_v42  ;;  %v734_v39 = vmul.f32 -1.442695, %v224_v37 }
  0x94   :  { %v1249_v53 = vpop.eup %900  ;;  %v379_v54 = vmul.f32 %v1245_v50, %v363_v45 }
  0x95   :  { %v1252_v57 = vpop.eup %902  ;;  %v393_v60 = vpack.c.bf16 %v378_v52, %v377_v48  ;;  %v380_v61 = vmul.f32 %v1249_v53, %v364_v49 }
  0x96   :  { %v1255_v62 = vpop.eup %904  ;;  %770 = vmatpush3.bf16.msra.mxu0 %v360_v51  ;;  %v381_v3 = vmul.f32 %v1252_v57, %v365_v55  ;;  %v537_v51 = vlaneseq  ;;  %v373_v55 = vld [vmem:[#allocation9 + $0x60] sm:$0xff] }
  0x97   :  { %v1257_v63 = vpop.eup %906  ;;  %776 = vmatpush3.bf16.msra.mxu1 %v393_v60  ;;  %v394_v2 = vpack.c.bf16 %v380_v61, %v379_v54  ;;  %v382_v4 = vmul.f32 %v1255_v62, %v366_v56  ;;  %v374_v56 = vld [vmem:[#allocation9 + $0x68] sm:$0xff] }
  0x98   :  { %v1261_v5 = vpop.eup %908  ;;  %777 = vmatprep.subr.bf16.mxu1 %v1097_v0  ;;  %v383_v14 = vmul.f32 %v1257_v63, %v367_v7  ;;  %v538_v52 = vand.u32 127, %v537_v51 }
  0x99   :  { %v911_v9 = vpop.eup %910  ;;  %772 = vmatmul.mubr.bf16.vlgmr.msra.gmra.mrb[0].mxu0 %v402_v58  ;;  %v395_v13 = vpack.c.bf16 %v382_v4, %v381_v3  ;;  %v384_v15 = vmul.f32 %v1261_v5, %v368_v8 }
  0x9a   :  { %v913_v10 = vpop.eup %912  ;;  %v385_v22 = vmul.f32 %v911_v9, %v369_v18  ;;  %vm556_vm1 = vcmp.lt.s32.totalorder %v538_v52, 16  ;;  %vm539_vm2 = vcmp.lt.s32.totalorder %v538_v52, 64 }
  0x9b   :  { %v915_v12 = vpop.eup %914  ;;  %778 = vmatpush3.bf16.msra.mxu1 %v394_v2  ;;  %v283_v16 = vadd.f32 1.0, %v913_v10  ;;  %v396_v21 = vpack.c.bf16 %v384_v15, %v383_v14  ;;  %v631_v61 = vsel %vm556_vm1, %v1240_v43, 0.0  ;;  %v632_v2 = vsel %vm556_vm1, %v1242_v46, 0.0  ;;  %v375_v10 = vld [vmem:[#allocation9 + $0x70] sm:$0xff] }
  0x9c   :  { %v917_v17 = vpop.eup %916  ;;  %779 = vmatprep.subr.bf16.mxu1 %v1097_v0  ;;  %v386_v23 = vmul.f32 %v915_v12, %v370_v19  ;;  %v647_v4 = vadd.f32 %v632_v2, %v631_v61  ;;  %v633_v7 = vsel %vm556_vm1, %v1245_v50, 0.0  ;;  %v376_v12 = vld [vmem:[#allocation9 + $0x78] sm:$0xff]  ;;  %v574_v43 = vsel %vm539_vm2, %v1224_v1, 0.0 }
  0x9d   :  { %v284_v20 = vadd.f32 1.0, %v917_v17  ;;  %918 = vrcp.f32 %v283_v16  ;;  %v573_v16 = vsel %vm539_vm2, %v1222_v59, 0.0  ;;  %v634_v46 = vsel %vm556_vm1, %v1249_v53, 0.0 }
  0x9e   :  { %v397_v24 = vpack.c.bf16 %v386_v23, %v385_v22  ;;  %v589_v50 = vadd.f32 %v574_v43, %v573_v16  ;;  %v575_v19 = vsel %vm539_vm2, %v1227_v6, 0.0  ;;  %v576_v1 = vsel %vm539_vm2, %v1230_v11, 0.0  ;;  %v735_v11 = vld [vmem:[%s1329_s3] ss:$0 sm:$0xff] }
  0x9f   :  { %780 = vmatpush3.bf16.msra.mxu1 %v395_v13  ;;  %920 = vrcp.f32 %v284_v20  ;;  %v648_v13 = vadd.f32 %v647_v4, %v633_v7  ;;  %v635_v20 = vsel %vm556_vm1, %v1252_v57, 0.0  ;;  %v636_v53 = vsel %vm556_vm1, %v1255_v62, 0.0 }
  0xa0   :  { %781 = vmatprep.subr.bf16.mxu1 %v1097_v0  ;;  %922 = vpow2.f32 %v731_v34  ;;  %v590_v59 = vadd.f32 %v589_v50, %v575_v19  ;;  %v638_v6 = vsel %vm556_vm1, %v1261_v5, 0.0 }
  0xa1   :  { %924 = vpow2.f32 %v732_v35  ;;  %v649_v18 = vadd.f32 %v648_v13, %v634_v46 }
  0xa2   :  { %926 = vpow2.f32 %v733_v38  ;;  %v591_v23 = vadd.f32 %v590_v59, %v576_v1 }
  0xa3   :  { %782 = vmatpush3.bf16.msra.mxu1 %v396_v21  ;;  %928 = vpow2.f32 %v734_v39  ;;  %v650_v22 = vadd.f32 %v649_v18, %v635_v20 }
  0xa4   :  { %783 = vmatprep.subr.bf16.mxu1 %v1097_v0  ;;  %604 = vadd.xlane.f32.xlu0 %v591_v23 }
  0xa7   :  { %v919_v26 = vpop.eup %918  ;;  %784 = vmatpush3.bf16.msra.mxu1 %v397_v24  ;;  %v651_v24 = vadd.f32 %v650_v22, %v636_v53 }
  0xa8   :  { %785 = vmatprep.subr.bf16.mxu1 %v1097_v0  ;;  %v387_v28 = vmul.f32 %v919_v26, %v371_v25 }
  0xa9   :  { %v921_v29 = vpop.eup %920 }
  0xaa   :  { %v388_v30 = vmul.f32 %v921_v29, %v372_v27  ;;  %v923_v40 = vpop.eup %922 }
  0xab   :  { %v925_v41 = vpop.eup %924  ;;  %v285_v42 = vadd.f32 1.0, %v923_v40 }
  0xac   :  { %v398_v31 = vpack.c.bf16 %v388_v30, %v387_v28  ;;  %v286_v44 = vadd.f32 1.0, %v925_v41  ;;  %v927_v45 = vpop.eup %926 }
  0xad   :  { %930 = vrcp.f32 %v285_v42  ;;  %v929_v47 = vpop.eup %928  ;;  %v287_v48 = vadd.f32 1.0, %v927_v45 }
  0xae   :  { %786 = vmatpush3.bf16.msra.mxu1 %v398_v31  ;;  %932 = vrcp.f32 %v286_v44  ;;  %v288_v49 = vadd.f32 1.0, %v929_v47 }
  0xaf   :  { %787 = vmatprep.subr.bf16.mxu1 %v1097_v0  ;;  %934 = vrcp.f32 %v287_v48 }
  0xb0   :  { %936 = vrcp.f32 %v288_v49 }
  0xb7   :  { %v931_v54 = vpop.eup %930 }
  0xb8   :  { %v933_v58 = vpop.eup %932  ;;  %v389_v60 = vmul.f32 %v931_v54, %v373_v55 }
  0xb9   :  { %v390_v3 = vmul.f32 %v933_v58, %v374_v56  ;;  %v935_v8 = vpop.eup %934 }
  0xba   :  { %v937_v14 = vpop.eup %936  ;;  %v391_v15 = vmul.f32 %v935_v8, %v375_v10 }
  0xbb   :  { %v399_v9 = vpack.c.bf16 %v390_v3, %v389_v60  ;;  %v392_v17 = vmul.f32 %v937_v14, %v376_v12 }
  0xbd   :  { %788 = vmatpush3.bf16.msra.mxu1 %v399_v9  ;;  %v400_v21 = vpack.c.bf16 %v392_v17, %v391_v15 }
  0xbe   :  { %789 = vmatprep.subr.bf16.mxu1 %v1097_v0  ;;  %v637_v0 = vsel %vm556_vm1, %v1257_v63, 0.0 }
  0xbf   :  { %v652_v57 = vadd.f32 %v651_v24, %v637_v0 }
  0xc1   :  { %790 = vmatpush3.bf16.msra.mxu1 %v400_v21  ;;  %v653_v25 = vadd.f32 %v652_v57, %v638_v6 }
  0xc3   :  { %662 = vadd.xlane.f32.xlu0 %v653_v25 }
 0x131   :  { %v605_v63 = vpop.xlane.xlu0 %604 }
 0x132   :  { %v606_v32 = vrot.slane %v605_v63, 4 }
 0x134   :  { %v607_v33 = vadd.f32 %v606_v32, %v605_v63 }
 0x136   :  { %v608_v5 = vrot.slane %v607_v33, 2 }
 0x138   :  { %v609_v37 = vadd.f32 %v608_v5, %v607_v33 }
 0x13a   :  { %v610_v39 = vrot.slane %v609_v37, 1 }
 0x13c   :  { %v611_v41 = vadd.f32 %v610_v39, %v609_v37 }
 0x13e   :  { %795 = vpush %v611_v41 }
 0x150   :  { %v663_v34 = vpop.xlane.xlu0 %662 }
 0x151   :  { %v664_v35 = vrot.slane %v663_v34, 4 }
 0x153   :  { %v665_v36 = vadd.f32 %v664_v35, %v663_v34 }
 0x155   :  { %v666_v38 = vrot.slane %v665_v36, 2 }
 0x157   :  { %v667_v40 = vadd.f32 %v666_v38, %v665_v36 }
 0x159   :  { %v668_v42 = vrot.slane %v667_v40, 1 }
 0x15b   :  { %v669_v44 = vadd.f32 %v668_v42, %v667_v40 }
 0x15d   :  { %797 = vpush %v669_v44 }
 0x16c   :  { %v444_v26 = vpop.f32.mrb[0].mxu0 }
 0x16d   :  { %v445_v27 = vadd.f32 %v735_v11, %v444_v26  ;;  %v773_v62 = vpop.f32.mrb[1].mxu0 }
 0x16e   :  { %v447_v28 = vpop.f32.mrb[2].mxu0 }
 0x16f   :  { %v450_v29 = vmax.f32 %v445_v27, 0.0  ;;  %v774_v30 = vpop.f32.mrb[3].mxu0  ;;  %s796_s3 = spop %795 }
 0x170   :  { %614 = sst [smem:[#allocation13]] %s796_s3 }
 0x171   :  { %v451_v31 = vpack.c.bf16 %v450_v29, %v450_v29 }
 0x173   :  { %792 = vmatmul.mubr.bf16.vlgmr.msra.gmra.mrb[0].mxu1 %v451_v31 }
 0x18e   :  { %s798_s16 = spop %797 }
 0x18f   :  { %672 = sst [smem:[#allocation13 + $0x1]] %s798_s16 }
 0x190   :  { %1057 = shalt.err (!%p1054_p0)
}
 0x191   :  { %s1099_s30 = smov [#allocation13]   ;;  %v736_v45 = vld [vmem:[%s1332_s6] ss:$0 sm:$0xff]  ;;  %s1100_s22 = smov [#allocation12]  }
 0x192   :  { %690 = dma.smem_to_hbm %s1099_s30, 16, %s1334_s8, [#allocation5]  }
 0x193   :  { %s679_s10 = sshll.u32 %s1100_s22, 4  ;;  %s680_s10 = int_to_ptr.vmem [resolvable:$true] %s679_s10 }
 0x194   :  { %s1058_s11 = scalar_lea.vmem %s680_s10, 128  ;;  %p1063_p2 = scmp.lt.s32.totalorder %s680_s10, %s680_s10 }
 0x195   :  { %p1059_p1 = scmp.ne.s32.totalorder %s680_s10, %s1058_s11  ;;  %p1064_p3 = scmp.lt.s32.totalorder %s1058_s11, %s1058_s11 }
 0x197   :  { %p1065_p4 = por %p1064_p3, %p1063_p2 }
 0x199   :  { %p1066_p5 = pnand %p1065_p4, %p1059_p1 }
 0x246   :  { %v493_v47 = vpop.f32.mrb[0].mxu1 }
 0x247   :  { %v494_v48 = vadd.f32 %v736_v45, %v493_v47  ;;  %v793_v49 = vpop.f32.mrb[1].mxu1 }
 0x248   :  { %v496_v51 = vpop.f32.mrb[2].mxu1 }
 0x249   :  { %499 = vst [vmem:[#allocation12] sm:$0xff] %v494_v48  ;;  %v794_v52 = vpop.f32.mrb[3].mxu1 }
 0x24a   :  { %1069 = shalt.err (!%p1066_p5)
}
 0x24b   :  { %s1070_s6 = scalar_lea.hbm %s1333_s7, 128 }
 0x24c   :  { %p1071_p6 = scmp.ne.s32.totalorder %s1333_s7, %s1070_s6  ;;  %p1074_p7 = scmp.lt.u32.totalorder %s1070_s6, %s1333_s7 }
 0x24e   :  { %p1076_p8 = pnand %p1074_p7, %p1071_p6 }
 0x250   :  { %1079 = shalt.err (!%p1076_p8)
}
 0x251   :  { %682 = dma.vmem_to_hbm [thread:$0]  %s680_s10, 128, %s1333_s7, [#allocation4]  }
 0x252   :  { %1086 = dma.done.wait [#allocation4], 128  }
 0x253   :  { %1087 = vsyncadd [#allocation4], 4294967168 }
 0x254   :  { %1088 = dma.done.wait [#allocation5], 16  }
 0x255   :  { %1089 = vsyncadd [#allocation5], 4294967280 }
 0x256   :  { %697 = sfence }
 0x257   :  { %698 = vsyncpa [#allocation3], 1 }
 0x258   :  { %699 = vsyncpa [#allocation7], 1 }
 0x259   :  { %700 = vsyncpa [#allocation10], 1 }
 0x25a   :  { %701 = vsyncpa [#allocation4], 1 }
 0x25b   :  { %702 = vsyncpa [#allocation5], 1 }

</bundles_post_ra>
